<compile_context>
chip_gen: v7x
topology: tpu7x:2x2x1
jax: 0.10.0
libtpu: 0.0.40
codegen_flags: <defaults>
</compile_context>

<pallas_src>
import functools
from typing import NamedTuple

import jax
import jax.numpy as jnp
from jax.experimental import pallas as pl
from jax.experimental.pallas import tpu as pltpu


# Block-size caps.  VMEM at the caps (bf16 operands, double-buffered inputs,
# f32 out block): 2*(512*2048 + 2048*256)*2B + 512*256*4B ~= 4.5 MiB, well
# inside the 32 MiB scoped limit on v6e and v7x (64 MiB physical part), so
# vmem_limit_bytes is left at its default.
_TM_MAX = 512   # rows per block (full-extent block when M <= this)
_TN_MAX = 256   # cols per block (matches the 256-wide MXU on v6e/v7x)


def _round_up(x, m):
    return (x + m - 1) // m * m


# ---------------------------------------------------------------------------
# Pallas kernel: single-pass matmul with fused bias + optional ReLU
# ---------------------------------------------------------------------------
def _matmul_bias_act_kernel(x_ref, w_ref, b_ref, o_ref, *, apply_relu):
    out = jnp.dot(x_ref[...], w_ref[...], preferred_element_type=jnp.float32)
    out = out + b_ref[...]
    if apply_relu:
        out = jnp.maximum(out, 0.0)
    o_ref[...] = out.astype(o_ref.dtype)


def pallas_matmul(x, w, b=None, *, apply_relu=False, out_dtype=jnp.float32,
                  operand_dtype=jnp.bfloat16):
    """out = relu?(x @ w + b).

    * No K grid axis: the full contraction is one block (K is small in every
      layer of this model), so there is no accumulator scratch or predicated
      epilogue.
    * M / N use full-extent blocks when small (no padding), otherwise
      8 / 128-aligned tiles up to _TM_MAX / _TN_MAX.
    """
    M, K = x.shape
    K2, N = w.shape
    assert K == K2, (x.shape, w.shape)

    x = x.astype(operand_dtype)
    w = w.astype(operand_dtype)          # no-op for pre-prepped weights
    if b is None:
        b = jnp.zeros((1, N), jnp.float32)
    b = jnp.asarray(b, jnp.float32).reshape(1, N)

    # ---- M blocking (sublane axis: multiple of 8, or full extent) ----
    Mp = _round_up(M, 8)
    if Mp <= _TM_MAX:
        tm = Mp
    else:
        tm = _TM_MAX
        Mp = _round_up(Mp, tm)
    if Mp != M:
        x = jnp.pad(x, ((0, Mp - M), (0, 0)))

    # ---- N blocking (lane axis: multiple of 128, or full extent) ----
    Np = N
    if N <= _TN_MAX:
        tn = N
    elif N % _TN_MAX == 0:
        tn = _TN_MAX
    elif N % 128 == 0:
        tn = 128
    else:
        Np = _round_up(N, 128)
        w = jnp.pad(w, ((0, 0), (0, Np - N)))
        b = jnp.pad(b, ((0, 0), (0, Np - N)))
        tn = Np if Np <= _TN_MAX else 128

    grid = (Mp // tm, Np // tn)
    kern = functools.partial(_matmul_bias_act_kernel, apply_relu=apply_relu)
    cost = pl.CostEstimate(
        flops=2 * Mp * Np * K,
        transcendentals=0,
        bytes_accessed=(x.size * x.dtype.itemsize + w.size * w.dtype.itemsize
                        + b.size * 4 + Mp * Np * jnp.dtype(out_dtype).itemsize),
    )

    out = pl.pallas_call(
        kern,
        out_shape=jax.ShapeDtypeStruct((Mp, Np), out_dtype),
        grid_spec=pltpu.PrefetchScalarGridSpec(
            num_scalar_prefetch=0,
            grid=grid,
            in_specs=[
                pl.BlockSpec((tm, K), lambda i, j: (i, 0)),
                pl.BlockSpec((K, tn), lambda i, j: (0, j)),
                pl.BlockSpec((1, tn), lambda i, j: (0, j)),
            ],
            out_specs=pl.BlockSpec((tm, tn), lambda i, j: (i, j)),
        ),
        compiler_params=pltpu.CompilerParams(
            # Both grid axes independent -> shardable over the 2 TCs on v7x.
            dimension_semantics=("parallel", "parallel")),
        cost_estimate=cost,
    )(x, w, b)

    if Mp != M or Np != N:
        out = out[:M, :N]
    return out


# ---------------------------------------------------------------------------
# Conv layer: weights prepped ONCE into the matmul kernel's layout
# ---------------------------------------------------------------------------
class ConvLayer(NamedTuple):
    wmat: jax.Array      # (kh*kw*cin, cout_padded), operand dtype
    bias: jax.Array      # (1, cout_padded), f32
    kh: int
    kw: int
    cin: int             # real input channels (im2col slices off alignment pad)
    cout: int            # real output channels


def prep_conv(w, b, operand_dtype=jnp.bfloat16, cout_align=128):
    kh, kw, cin, cout = w.shape
    coutp = _round_up(cout, cout_align)
    wmat = jnp.pad(w.reshape(kh * kw * cin, cout), ((0, 0), (0, coutp - cout)))
    bias = jnp.pad(b, (0, coutp - cout)).reshape(1, coutp)
    return ConvLayer(wmat.astype(operand_dtype), bias.astype(jnp.float32),
                     kh, kw, cin, cout)


def conv2d(x_nhwc, layer, *, stride=1, padding=0, relu=False,
           out_dtype=jnp.bfloat16, operand_dtype=jnp.bfloat16):
    """x: [N,H,W,C] with C >= layer.cin (extra channels are alignment padding).
    Output keeps its channel axis padded to 128 (lane-dense stores, no
    slice/re-pad round trip between layers)."""
    kh, kw, cin = layer.kh, layer.kw, layer.cin
    x = x_nhwc[..., :cin]      # real channels; fused with the im2col slicing
    xp = jnp.pad(x, ((0, 0), (padding, padding), (padding, padding), (0, 0)))
    N, H, W, _ = xp.shape
    Ho = (H - kh) // stride + 1
    Wo = (W - kw) // stride + 1

    # TODO(synk): at ResNet50 scale the kh*kw taps should be accumulated inside
    #             the kernel from a VMEM-resident NHWC tile instead of this
    #             HBM-materialized im2col patch array.
    cols = [xp[:, i:i + stride * Ho:stride, j:j + stride * Wo:stride, :]
            for i in range(kh) for j in range(kw)]
    patches = jnp.concatenate(cols, axis=-1).reshape(N * Ho * Wo, kh * kw * cin)

    out = pallas_matmul(patches, layer.wmat, layer.bias, apply_relu=relu,
                        out_dtype=out_dtype, operand_dtype=operand_dtype)
    return out.reshape(N, Ho, Wo, out.shape[-1])


# ---------------------------------------------------------------------------
# Bilinear upsample (align_corners=True), separable: W-axis then H-axis matmul
# ---------------------------------------------------------------------------
def _interp_matrix(out_size, in_size):
    if in_size == 1:
        return jnp.ones((out_size, 1), jnp.float32)
    if out_size == 1:
        pos = jnp.zeros((1,), jnp.float32)
    else:
        pos = jnp.arange(out_size, dtype=jnp.float32) * (in_size - 1) / (out_size - 1)
    lo = jnp.clip(jnp.floor(pos).astype(jnp.int32), 0, in_size - 2)
    frac = pos - lo.astype(jnp.float32)
    rows = jnp.arange(out_size)
    M = jnp.zeros((out_size, in_size), jnp.float32)
    M = M.at[rows, lo].add(1.0 - frac)
    M = M.at[rows, lo + 1].add(frac)
    return M


def bilinear_upsample(x_nhwc, out_h, out_w):
    """Two skinny matmuls instead of a dense kron(Mh, Mw).  f32 operands for
    parity with the PyTorch f32 reference; C stays lane-minor throughout."""
    N, H, W, C = x_nhwc.shape
    x = x_nhwc.astype(jnp.float32)

    # width axis
    Mw = _interp_matrix(out_w, W)
    xw = jnp.transpose(x, (2, 0, 1, 3)).reshape(W, N * H * C)
    yw = pallas_matmul(Mw, xw, out_dtype=jnp.float32, operand_dtype=jnp.float32)
    yw = jnp.transpose(yw.reshape(out_w, N, H, C), (1, 2, 0, 3))   # (N,H,out_w,C)

    # height axis
    Mh = _interp_matrix(out_h, H)
    xh = jnp.transpose(yw, (1, 0, 2, 3)).reshape(H, N * out_w * C)
    yh = pallas_matmul(Mh, xh, out_dtype=jnp.float32, operand_dtype=jnp.float32)
    return jnp.transpose(yh.reshape(out_h, N, out_w, C), (1, 0, 2, 3))


# ---------------------------------------------------------------------------
# Deterministic parameter init (scaled-down FCN: backbone + seg head + aux head)
# ---------------------------------------------------------------------------
def init_params(key, in_ch=3, num_classes=8):
    def conv_init(k, kh, kw, cin, cout):
        kw_, kb_ = jax.random.split(k)
        w = 0.1 * jax.random.normal(kw_, (kh, kw, cin, cout), dtype=jnp.float32)
        b = 0.01 * jax.random.normal(kb_, (cout,), dtype=jnp.float32)
        return w, b

    keys = jax.random.split(key, 7)
    return {
        "conv1": conv_init(keys[0], 3, 3, in_ch, 16),        # stride 2
        "conv2": conv_init(keys[1], 3, 3, 16, 32),            # stride 2 -> c3
        "conv3": conv_init(keys[2], 3, 3, 32, 32),            # -> c4
        "seg1": conv_init(keys[3], 3, 3, 32, 16),
        "seg2": conv_init(keys[4], 1, 1, 16, num_classes),
        "aux1": conv_init(keys[5], 3, 3, 32, 16),
        "aux2": conv_init(keys[6], 1, 1, 16, num_classes),
    }


def prep_params(raw):
    """Hoisted weight prep: reshape/pad/cast each conv ONCE, not per forward.
    Backbone + head-3x3 layers use bf16 operands; 1x1 classifiers stay f32."""
    p = {}
    for name in ("conv1", "conv2", "conv3", "seg1", "aux1"):
        w, b = raw[name]
        p[name] = prep_conv(w, b, operand_dtype=jnp.bfloat16)
    for name in ("seg2", "aux2"):
        w, b = raw[name]
        p[name] = prep_conv(w, b, operand_dtype=jnp.float32)
    return p


# ---------------------------------------------------------------------------
# FCN.forward(x, y=None) -> (seg, aux, None)   (NCHW in / NCHW out)
# ---------------------------------------------------------------------------
def fcn_forward(layers, x_nchw):
    x = jnp.transpose(x_nchw, (0, 2, 3, 1))        # -> NHWC

    # backbone (scaled-down, dilated-ResNet stand-in); activations carry a
    # 128-padded channel axis between layers (no re-pad / slice per layer).
    h1 = conv2d(x, layers["conv1"], stride=2, padding=1, relu=True)
    c3 = conv2d(h1, layers["conv2"], stride=2, padding=1, relu=True)
    c4 = conv2d(c3, layers["conv3"], stride=1, padding=1, relu=True)

    # FCN seg head: 3x3 conv + ReLU + 1x1 classifier (dropout is identity in eval)
    s = conv2d(c4, layers["seg1"], stride=1, padding=1, relu=True)
    s = conv2d(s, layers["seg2"], stride=1, padding=0, relu=False,
               out_dtype=jnp.float32, operand_dtype=jnp.float32)

    # aux head on the intermediate (c3) feature
    a = conv2d(c3, layers["aux1"], stride=1, padding=1, relu=True)
    a = conv2d(a, layers["aux2"], stride=1, padding=0, relu=False,
               out_dtype=jnp.float32, operand_dtype=jnp.float32)

    # one separable upsample for BOTH heads (concat along the class axis keeps
    # the store lane width at a 128 multiple and halves the launches)
    H, W = x_nchw.shape[2], x_nchw.shape[3]
    nc = layers["seg2"].cout
    logits = jnp.concatenate([s[..., :nc], a[..., :nc]], axis=-1)
    up = bilinear_upsample(logits, H, W)
    seg = jnp.transpose(up[..., :nc], (0, 3, 1, 2))        # -> NCHW
    aux = jnp.transpose(up[..., nc:], (0, 3, 1, 2))
    return seg, aux, None


if __name__ == "__main__":
    key = jax.random.PRNGKey(0)
    pkey, xkey = jax.random.split(key)

    raw = init_params(pkey, in_ch=3, num_classes=8)
    layers = prep_params(raw)                      # weight prep hoisted out of forward
    x = jax.random.normal(xkey, (2, 3, 16, 16), dtype=jnp.float32)  # NCHW like PyTorch

    fwd = jax.jit(lambda inp: fcn_forward(layers, inp))
    seg, aux, none_out = fwd(x)
    seg = jax.block_until_ready(seg)
    aux = jax.block_until_ready(aux)

    assert seg.shape == (2, 8, 16, 16), seg.shape
    assert aux.shape == (2, 8, 16, 16), aux.shape
    assert none_out is None
    assert jnp.all(jnp.isfinite(seg)) and jnp.all(jnp.isfinite(aux))
    print("KERNEL_OK")
</pallas_src>

<mosaic_0001>
module attributes {stable_mosaic.version = 11 : i64} {
  func.func private @main(%arg0: i32) attributes {dimension_semantics = [#tpu.dimension_semantics<core_parallel>], iteration_bounds = array<i64: 2>, tpu.core_type = #tpu.core_type<sc_scalar_subcore>, window_params = []} {
    return
  }
}

module attributes {stable_mosaic.version = 11 : i64} {
  func.func private @main(%arg0: i32) attributes {dimension_semantics = [#tpu.dimension_semantics<core_parallel>], iteration_bounds = array<i64: 2>, tpu.core_type = #tpu.core_type<sc_scalar_subcore>, window_params = []} {
    return
  }
}

module attributes {stable_mosaic.version = 11 : i64} {
  func.func @_matmul_bias_act_kernel(%arg0: i32, %arg1: i32, %arg2: memref<128x27xbf16, #tpu.memory_space<vmem>>, %arg3: memref<27x128xbf16, #tpu.memory_space<vmem>>, %arg4: memref<1x128xf32, #tpu.memory_space<vmem>>, %arg5: memref<128x128xbf16, #tpu.memory_space<vmem>>) attributes {dimension_semantics = [#tpu.dimension_semantics<parallel>, #tpu.dimension_semantics<parallel>], iteration_bounds = array<i64: 1, 1>, scalar_prefetch = 0 : i64, scratch_operands = 0 : i64, tpu.core_type = #tpu.core_type<tc>, window_params = [{transform_indices = @transform_0, window_bounds = array<i64: 128, 27>}, {transform_indices = @transform_1, window_bounds = array<i64: 27, 128>}, {transform_indices = @transform_2, window_bounds = array<i64: 1, 128>}, {transform_indices = @transform_3, window_bounds = array<i64: 128, 128>}]} {
    %c0 = arith.constant 0 : index
    %c0_0 = arith.constant 0 : index
    %0 = vector.load %arg2[%c0, %c0_0] : memref<128x27xbf16, #tpu.memory_space<vmem>>, vector<128x27xbf16>
    %c0_1 = arith.constant 0 : index
    %c0_2 = arith.constant 0 : index
    %1 = vector.load %arg3[%c0_1, %c0_2] : memref<27x128xbf16, #tpu.memory_space<vmem>>, vector<27x128xbf16>
    %cst = arith.constant dense<0.000000e+00> : vector<128x128xf32>
    %2 = tpu.matmul %0, %1, %cst {dimension_numbers = #tpu.dot_dimension_numbers<[1], [0], [0], [1], [0, 0, 1, 1], [], []>} : vector<128x27xbf16>, vector<27x128xbf16>, vector<128x128xf32> -> vector<128x128xf32>
    %c0_3 = arith.constant 0 : index
    %c0_4 = arith.constant 0 : index
    %3 = vector.load %arg4[%c0_3, %c0_4] : memref<1x128xf32, #tpu.memory_space<vmem>>, vector<1x128xf32>
    %4 = vector.broadcast %3 : vector<1x128xf32> to vector<128x128xf32>
    %5 = arith.addf %2, %4 : vector<128x128xf32>
    %cst_5 = arith.constant 0.000000e+00 : f32
    %6 = vector.broadcast %cst_5 : f32 to vector<128x128xf32>
    %7 = arith.maximumf %5, %6 : vector<128x128xf32>
    %8 = arith.truncf %7 : vector<128x128xf32> to vector<128x128xbf16>
    %c0_6 = arith.constant 0 : index
    %c0_7 = arith.constant 0 : index
    %9 = vector.load %arg5[%c0_6, %c0_7] : memref<128x128xbf16, #tpu.memory_space<vmem>>, vector<128x128xbf16>
    tpu.vector_store %arg5[%c0_6, %c0_7], %8 {strides = array<i32>} : memref<128x128xbf16, #tpu.memory_space<vmem>>, vector<128x128xbf16>,
    return
  }
  func.func @transform_0(%arg0: i32, %arg1: i32) -> (i32, i32) {
    %c0_i32 = arith.constant 0 : i32
    %c0_i32_0 = arith.constant 0 : i32
    return %arg0, %c0_i32 : i32, i32
  }
  func.func @transform_1(%arg0: i32, %arg1: i32) -> (i32, i32) {
    %c0_i32 = arith.constant 0 : i32
    %c0_i32_0 = arith.constant 0 : i32
    return %c0_i32, %arg1 : i32, i32
  }
  func.func @transform_2(%arg0: i32, %arg1: i32) -> (i32, i32) {
    %c0_i32 = arith.constant 0 : i32
    %c0_i32_0 = arith.constant 0 : i32
    return %c0_i32, %arg1 : i32, i32
  }
  func.func @transform_3(%arg0: i32, %arg1: i32) -> (i32, i32) {
    %c0_i32 = arith.constant 0 : i32
    return %arg0, %arg1 : i32, i32
  }
}

module attributes {stable_mosaic.version = 11 : i64} {
  func.func @_matmul_bias_act_kernel(%arg0: i32, %arg1: i32, %arg2: memref<32x144xbf16, #tpu.memory_space<vmem>>, %arg3: memref<144x128xbf16, #tpu.memory_space<vmem>>, %arg4: memref<1x128xf32, #tpu.memory_space<vmem>>, %arg5: memref<32x128xbf16, #tpu.memory_space<vmem>>) attributes {dimension_semantics = [#tpu.dimension_semantics<parallel>, #tpu.dimension_semantics<parallel>], iteration_bounds = array<i64: 1, 1>, scalar_prefetch = 0 : i64, scratch_operands = 0 : i64, tpu.core_type = #tpu.core_type<tc>, window_params = [{transform_indices = @transform_0, window_bounds = array<i64: 32, 144>}, {transform_indices = @transform_1, window_bounds = array<i64: 144, 128>}, {transform_indices = @transform_2, window_bounds = array<i64: 1, 128>}, {transform_indices = @transform_3, window_bounds = array<i64: 32, 128>}]} {
    %c0 = arith.constant 0 : index
    %c0_0 = arith.constant 0 : index
    %0 = vector.load %arg2[%c0, %c0_0] : memref<32x144xbf16, #tpu.memory_space<vmem>>, vector<32x144xbf16>
    %c0_1 = arith.constant 0 : index
    %c0_2 = arith.constant 0 : index
    %1 = vector.load %arg3[%c0_1, %c0_2] : memref<144x128xbf16, #tpu.memory_space<vmem>>, vector<144x128xbf16>
    %cst = arith.constant dense<0.000000e+00> : vector<32x128xf32>
    %2 = tpu.matmul %0, %1, %cst {dimension_numbers = #tpu.dot_dimension_numbers<[1], [0], [0], [1], [0, 0, 1, 1], [], []>} : vector<32x144xbf16>, vector<144x128xbf16>, vector<32x128xf32> -> vector<32x128xf32>
    %c0_3 = arith.constant 0 : index
    %c0_4 = arith.constant 0 : index
    %3 = vector.load %arg4[%c0_3, %c0_4] : memref<1x128xf32, #tpu.memory_space<vmem>>, vector<1x128xf32>
    %4 = vector.broadcast %3 : vector<1x128xf32> to vector<32x128xf32>
    %5 = arith.addf %2, %4 : vector<32x128xf32>
    %cst_5 = arith.constant 0.000000e+00 : f32
    %6 = vector.broadcast %cst_5 : f32 to vector<32x128xf32>
    %7 = arith.maximumf %5, %6 : vector<32x128xf32>
    %8 = arith.truncf %7 : vector<32x128xf32> to vector<32x128xbf16>
    %c0_6 = arith.constant 0 : index
    %c0_7 = arith.constant 0 : index
    %9 = vector.load %arg5[%c0_6, %c0_7] : memref<32x128xbf16, #tpu.memory_space<vmem>>, vector<32x128xbf16>
    tpu.vector_store %arg5[%c0_6, %c0_7], %8 {strides = array<i32>} : memref<32x128xbf16, #tpu.memory_space<vmem>>, vector<32x128xbf16>,
    return
  }
  func.func @transform_0(%arg0: i32, %arg1: i32) -> (i32, i32) {
    %c0_i32 = arith.constant 0 : i32
    %c0_i32_0 = arith.constant 0 : i32
    return %arg0, %c0_i32 : i32, i32
  }
  func.func @transform_1(%arg0: i32, %arg1: i32) -> (i32, i32) {
    %c0_i32 = arith.constant 0 : i32
    %c0_i32_0 = arith.constant 0 : i32
    return %c0_i32, %arg1 : i32, i32
  }
  func.func @transform_2(%arg0: i32, %arg1: i32) -> (i32, i32) {
    %c0_i32 = arith.constant 0 : i32
    %c0_i32_0 = arith.constant 0 : i32
    return %c0_i32, %arg1 : i32, i32
  }
  func.func @transform_3(%arg0: i32, %arg1: i32) -> (i32, i32) {
    %c0_i32 = arith.constant 0 : i32
    return %arg0, %arg1 : i32, i32
  }
}

module attributes {stable_mosaic.version = 11 : i64} {
  func.func @_matmul_bias_act_kernel(%arg0: i32, %arg1: i32, %arg2: memref<32x288xbf16, #tpu.memory_space<vmem>>, %arg3: memref<288x128xbf16, #tpu.memory_space<vmem>>, %arg4: memref<1x128xf32, #tpu.memory_space<vmem>>, %arg5: memref<32x128xbf16, #tpu.memory_space<vmem>>) attributes {dimension_semantics = [#tpu.dimension_semantics<parallel>, #tpu.dimension_semantics<parallel>], iteration_bounds = array<i64: 1, 1>, scalar_prefetch = 0 : i64, scratch_operands = 0 : i64, tpu.core_type = #tpu.core_type<tc>, window_params = [{transform_indices = @transform_0, window_bounds = array<i64: 32, 288>}, {transform_indices = @transform_1, window_bounds = array<i64: 288, 128>}, {transform_indices = @transform_2, window_bounds = array<i64: 1, 128>}, {transform_indices = @transform_3, window_bounds = array<i64: 32, 128>}]} {
    %c0 = arith.constant 0 : index
    %c0_0 = arith.constant 0 : index
    %0 = vector.load %arg2[%c0, %c0_0] : memref<32x288xbf16, #tpu.memory_space<vmem>>, vector<32x288xbf16>
    %c0_1 = arith.constant 0 : index
    %c0_2 = arith.constant 0 : index
    %1 = vector.load %arg3[%c0_1, %c0_2] : memref<288x128xbf16, #tpu.memory_space<vmem>>, vector<288x128xbf16>
    %cst = arith.constant dense<0.000000e+00> : vector<32x128xf32>
    %2 = tpu.matmul %0, %1, %cst {dimension_numbers = #tpu.dot_dimension_numbers<[1], [0], [0], [1], [0, 0, 1, 1], [], []>} : vector<32x288xbf16>, vector<288x128xbf16>, vector<32x128xf32> -> vector<32x128xf32>
    %c0_3 = arith.constant 0 : index
    %c0_4 = arith.constant 0 : index
    %3 = vector.load %arg4[%c0_3, %c0_4] : memref<1x128xf32, #tpu.memory_space<vmem>>, vector<1x128xf32>
    %4 = vector.broadcast %3 : vector<1x128xf32> to vector<32x128xf32>
    %5 = arith.addf %2, %4 : vector<32x128xf32>
    %cst_5 = arith.constant 0.000000e+00 : f32
    %6 = vector.broadcast %cst_5 : f32 to vector<32x128xf32>
    %7 = arith.maximumf %5, %6 : vector<32x128xf32>
    %8 = arith.truncf %7 : vector<32x128xf32> to vector<32x128xbf16>
    %c0_6 = arith.constant 0 : index
    %c0_7 = arith.constant 0 : index
    %9 = vector.load %arg5[%c0_6, %c0_7] : memref<32x128xbf16, #tpu.memory_space<vmem>>, vector<32x128xbf16>
    tpu.vector_store %arg5[%c0_6, %c0_7], %8 {strides = array<i32>} : memref<32x128xbf16, #tpu.memory_space<vmem>>, vector<32x128xbf16>,
    return
  }
  func.func @transform_0(%arg0: i32, %arg1: i32) -> (i32, i32) {
    %c0_i32 = arith.constant 0 : i32
    %c0_i32_0 = arith.constant 0 : i32
    return %arg0, %c0_i32 : i32, i32
  }
  func.func @transform_1(%arg0: i32, %arg1: i32) -> (i32, i32) {
    %c0_i32 = arith.constant 0 : i32
    %c0_i32_0 = arith.constant 0 : i32
    return %c0_i32, %arg1 : i32, i32
  }
  func.func @transform_2(%arg0: i32, %arg1: i32) -> (i32, i32) {
    %c0_i32 = arith.constant 0 : i32
    %c0_i32_0 = arith.constant 0 : i32
    return %c0_i32, %arg1 : i32, i32
  }
  func.func @transform_3(%arg0: i32, %arg1: i32) -> (i32, i32) {
    %c0_i32 = arith.constant 0 : i32
    return %arg0, %arg1 : i32, i32
  }
}

module attributes {stable_mosaic.version = 11 : i64} {
  func.func @_matmul_bias_act_kernel(%arg0: i32, %arg1: i32, %arg2: memref<32x16xf32, #tpu.memory_space<vmem>>, %arg3: memref<16x128xf32, #tpu.memory_space<vmem>>, %arg4: memref<1x128xf32, #tpu.memory_space<vmem>>, %arg5: memref<32x128xf32, #tpu.memory_space<vmem>>) attributes {dimension_semantics = [#tpu.dimension_semantics<parallel>, #tpu.dimension_semantics<parallel>], iteration_bounds = array<i64: 1, 1>, scalar_prefetch = 0 : i64, scratch_operands = 0 : i64, tpu.core_type = #tpu.core_type<tc>, window_params = [{transform_indices = @transform_0, window_bounds = array<i64: 32, 16>}, {transform_indices = @transform_1, window_bounds = array<i64: 16, 128>}, {transform_indices = @transform_2, window_bounds = array<i64: 1, 128>}, {transform_indices = @transform_3, window_bounds = array<i64: 32, 128>}]} {
    %c0 = arith.constant 0 : index
    %c0_0 = arith.constant 0 : index
    %0 = vector.load %arg2[%c0, %c0_0] : memref<32x16xf32, #tpu.memory_space<vmem>>, vector<32x16xf32>
    %c0_1 = arith.constant 0 : index
    %c0_2 = arith.constant 0 : index
    %1 = vector.load %arg3[%c0_1, %c0_2] : memref<16x128xf32, #tpu.memory_space<vmem>>, vector<16x128xf32>
    %cst = arith.constant dense<0.000000e+00> : vector<32x128xf32>
    %2 = tpu.matmul %0, %1, %cst {dimension_numbers = #tpu.dot_dimension_numbers<[1], [0], [0], [1], [0, 0, 1, 1], [], []>} : vector<32x16xf32>, vector<16x128xf32>, vector<32x128xf32> -> vector<32x128xf32>
    %c0_3 = arith.constant 0 : index
    %c0_4 = arith.constant 0 : index
    %3 = vector.load %arg4[%c0_3, %c0_4] : memref<1x128xf32, #tpu.memory_space<vmem>>, vector<1x128xf32>
    %4 = vector.broadcast %3 : vector<1x128xf32> to vector<32x128xf32>
    %5 = arith.addf %2, %4 : vector<32x128xf32>
    %c0_5 = arith.constant 0 : index
    %c0_6 = arith.constant 0 : index
    %6 = vector.load %arg5[%c0_5, %c0_6] : memref<32x128xf32, #tpu.memory_space<vmem>>, vector<32x128xf32>
    tpu.vector_store %arg5[%c0_5, %c0_6], %5 {strides = array<i32>} : memref<32x128xf32, #tpu.memory_space<vmem>>, vector<32x128xf32>,
    return
  }
  func.func @transform_0(%arg0: i32, %arg1: i32) -> (i32, i32) {
    %c0_i32 = arith.constant 0 : i32
    %c0_i32_0 = arith.constant 0 : i32
    return %arg0, %c0_i32 : i32, i32
  }
  func.func @transform_1(%arg0: i32, %arg1: i32) -> (i32, i32) {
    %c0_i32 = arith.constant 0 : i32
    %c0_i32_0 = arith.constant 0 : i32
    return %c0_i32, %arg1 : i32, i32
  }
  func.func @transform_2(%arg0: i32, %arg1: i32) -> (i32, i32) {
    %c0_i32 = arith.constant 0 : i32
    %c0_i32_0 = arith.constant 0 : i32
    return %c0_i32, %arg1 : i32, i32
  }
  func.func @transform_3(%arg0: i32, %arg1: i32) -> (i32, i32) {
    %c0_i32 = arith.constant 0 : i32
    return %arg0, %arg1 : i32, i32
  }
}

module attributes {stable_mosaic.version = 11 : i64} {
  func.func @_matmul_bias_act_kernel(%arg0: i32, %arg1: i32, %arg2: memref<16x4xf32, #tpu.memory_space<vmem>>, %arg3: memref<4x128xf32, #tpu.memory_space<vmem>>, %arg4: memref<1x128xf32, #tpu.memory_space<vmem>>, %arg5: memref<16x128xf32, #tpu.memory_space<vmem>>) attributes {dimension_semantics = [#tpu.dimension_semantics<parallel>, #tpu.dimension_semantics<parallel>], iteration_bounds = array<i64: 1, 1>, scalar_prefetch = 0 : i64, scratch_operands = 0 : i64, tpu.core_type = #tpu.core_type<tc>, window_params = [{transform_indices = @transform_0, window_bounds = array<i64: 16, 4>}, {transform_indices = @transform_1, window_bounds = array<i64: 4, 128>}, {transform_indices = @transform_2, window_bounds = array<i64: 1, 128>}, {transform_indices = @transform_3, window_bounds = array<i64: 16, 128>}]} {
    %c0 = arith.constant 0 : index
    %c0_0 = arith.constant 0 : index
    %0 = vector.load %arg2[%c0, %c0_0] : memref<16x4xf32, #tpu.memory_space<vmem>>, vector<16x4xf32>
    %c0_1 = arith.constant 0 : index
    %c0_2 = arith.constant 0 : index
    %1 = vector.load %arg3[%c0_1, %c0_2] : memref<4x128xf32, #tpu.memory_space<vmem>>, vector<4x128xf32>
    %cst = arith.constant dense<0.000000e+00> : vector<16x128xf32>
    %2 = tpu.matmul %0, %1, %cst {dimension_numbers = #tpu.dot_dimension_numbers<[1], [0], [0], [1], [0, 0, 1, 1], [], []>} : vector<16x4xf32>, vector<4x128xf32>, vector<16x128xf32> -> vector<16x128xf32>
    %c0_3 = arith.constant 0 : index
    %c0_4 = arith.constant 0 : index
    %3 = vector.load %arg4[%c0_3, %c0_4] : memref<1x128xf32, #tpu.memory_space<vmem>>, vector<1x128xf32>
    %4 = vector.broadcast %3 : vector<1x128xf32> to vector<16x128xf32>
    %5 = arith.addf %2, %4 : vector<16x128xf32>
    %c0_5 = arith.constant 0 : index
    %c0_6 = arith.constant 0 : index
    %6 = vector.load %arg5[%c0_5, %c0_6] : memref<16x128xf32, #tpu.memory_space<vmem>>, vector<16x128xf32>
    tpu.vector_store %arg5[%c0_5, %c0_6], %5 {strides = array<i32>} : memref<16x128xf32, #tpu.memory_space<vmem>>, vector<16x128xf32>,
    return
  }
  func.func @transform_0(%arg0: i32, %arg1: i32) -> (i32, i32) {
    %c0_i32 = arith.constant 0 : i32
    %c0_i32_0 = arith.constant 0 : i32
    return %arg0, %c0_i32 : i32, i32
  }
  func.func @transform_1(%arg0: i32, %arg1: i32) -> (i32, i32) {
    %c0_i32 = arith.constant 0 : i32
    %c0_i32_0 = arith.constant 0 : i32
    return %c0_i32, %arg1 : i32, i32
  }
  func.func @transform_2(%arg0: i32, %arg1: i32) -> (i32, i32) {
    %c0_i32 = arith.constant 0 : i32
    %c0_i32_0 = arith.constant 0 : i32
    return %c0_i32, %arg1 : i32, i32
  }
  func.func @transform_3(%arg0: i32, %arg1: i32) -> (i32, i32) {
    %c0_i32 = arith.constant 0 : i32
    return %arg0, %arg1 : i32, i32
  }
}

module attributes {stable_mosaic.version = 11 : i64} {
  func.func @_matmul_bias_act_kernel(%arg0: i32, %arg1: i32, %arg2: memref<16x4xf32, #tpu.memory_space<vmem>>, %arg3: memref<4x256xf32, #tpu.memory_space<vmem>>, %arg4: memref<1x256xf32, #tpu.memory_space<vmem>>, %arg5: memref<16x256xf32, #tpu.memory_space<vmem>>) attributes {dimension_semantics = [#tpu.dimension_semantics<parallel>, #tpu.dimension_semantics<parallel>], iteration_bounds = array<i64: 1, 2>, scalar_prefetch = 0 : i64, scratch_operands = 0 : i64, tpu.core_type = #tpu.core_type<tc>, window_params = [{transform_indices = @transform_0, window_bounds = array<i64: 16, 4>}, {transform_indices = @transform_1, window_bounds = array<i64: 4, 256>}, {transform_indices = @transform_2, window_bounds = array<i64: 1, 256>}, {transform_indices = @transform_3, window_bounds = array<i64: 16, 256>}]} {
    %c0 = arith.constant 0 : index
    %c0_0 = arith.constant 0 : index
    %0 = vector.load %arg2[%c0, %c0_0] : memref<16x4xf32, #tpu.memory_space<vmem>>, vector<16x4xf32>
    %c0_1 = arith.constant 0 : index
    %c0_2 = arith.constant 0 : index
    %1 = vector.load %arg3[%c0_1, %c0_2] : memref<4x256xf32, #tpu.memory_space<vmem>>, vector<4x256xf32>
    %cst = arith.constant dense<0.000000e+00> : vector<16x256xf32>
    %2 = tpu.matmul %0, %1, %cst {dimension_numbers = #tpu.dot_dimension_numbers<[1], [0], [0], [1], [0, 0, 1, 1], [], []>} : vector<16x4xf32>, vector<4x256xf32>, vector<16x256xf32> -> vector<16x256xf32>
    %c0_3 = arith.constant 0 : index
    %c0_4 = arith.constant 0 : index
    %3 = vector.load %arg4[%c0_3, %c0_4] : memref<1x256xf32, #tpu.memory_space<vmem>>, vector<1x256xf32>
    %4 = vector.broadcast %3 : vector<1x256xf32> to vector<16x256xf32>
    %5 = arith.addf %2, %4 : vector<16x256xf32>
    %c0_5 = arith.constant 0 : index
    %c0_6 = arith.constant 0 : index
    %6 = vector.load %arg5[%c0_5, %c0_6] : memref<16x256xf32, #tpu.memory_space<vmem>>, vector<16x256xf32>
    tpu.vector_store %arg5[%c0_5, %c0_6], %5 {strides = array<i32>} : memref<16x256xf32, #tpu.memory_space<vmem>>, vector<16x256xf32>,
    return
  }
  func.func @transform_0(%arg0: i32, %arg1: i32) -> (i32, i32) {
    %c0_i32 = arith.constant 0 : i32
    %c0_i32_0 = arith.constant 0 : i32
    return %arg0, %c0_i32 : i32, i32
  }
  func.func @transform_1(%arg0: i32, %arg1: i32) -> (i32, i32) {
    %c0_i32 = arith.constant 0 : i32
    %c0_i32_0 = arith.constant 0 : i32
    return %c0_i32, %arg1 : i32, i32
  }
  func.func @transform_2(%arg0: i32, %arg1: i32) -> (i32, i32) {
    %c0_i32 = arith.constant 0 : i32
    %c0_i32_0 = arith.constant 0 : i32
    return %c0_i32, %arg1 : i32, i32
  }
  func.func @transform_3(%arg0: i32, %arg1: i32) -> (i32, i32) {
    %c0_i32 = arith.constant 0 : i32
    return %arg0, %arg1 : i32, i32
  }
}

</mosaic_0001>

<bundles_post_ra>
// kernel: _lambda_.9
= control target key start
LH: loop header
LB: loop body
LE: loop exit
PB: predicated region body
PF: predicated region fallthrough
CT: control target
= control target key end

     0   :  { %vm118_vm0 = vcmask 1044480   ;;  %vm119_vm1 = vcmask 1045504   ;;  %vm93_vm2 = vcmask 220160   ;;  %v465_v1 = vmov 65535   ;;  %s551_s1 = inlined_call_operand.vmem [shape: bf16[27,128], index: 1, kind: input, shape index: {}]   ;;  %s552_s0 = inlined_call_operand.vmem [shape: bf16[128,27], index: 0, kind: input, shape index: {}]   ;;  %s553_s2 = inlined_call_operand.vmem [shape: f32[1,128], index: 2, kind: input, shape index: {}]   ;;  %s554_s3 = inlined_call_operand.vmem [shape: bf16[128,128], index: 3, kind: output, shape index: {}]  }
   0x1   :  { %v455_v0 = vld [vmem:[%s551_s1] sm:$0xff]   ;;  %v120_v2 = vsel %vm118_vm0, 4294967295, %v465_v1  ;;  %v456_v3 = vld [vmem:[%s551_s1 + $0x8] sm:$0x3f]   ;;  %v461_v10 = vld [vmem:[%s552_s0 + $0x10] sm:$0xff]  }
   0x2   :  { %430 = vmatprep.subr.bf16.mxu0 %v455_v0  ;;  %450 = vmatprep.subr.bf16.mxu1 %v455_v0  ;;  %v121_v4 = vsel %vm119_vm1, %v120_v2, 0  ;;  %v457_v5 = vld [vmem:[%s552_s0] sm:$0xff]   ;;  %v459_v8 = vld [vmem:[%s552_s0 + $0x8] sm:$0xff]   ;;  %v462_v11 = vld [vmem:[%s552_s0 + $0x30] sm:$0xff]  }
   0x3   :  { %431 = vmatpush3.bf16.msra.mxu0 %v455_v0  ;;  %452 = vmatpush3.bf16.msra.mxu1 %v455_v0  ;;  %v123_v6 = vand.u32 %v456_v3, %v121_v4  ;;  %v458_v7 = vld [vmem:[%s552_s0 + $0x20] sm:$0xff]   ;;  %v460_v9 = vld [vmem:[%s552_s0 + $0x28] sm:$0xff]   ;;  %v463_v12 = vld [vmem:[%s552_s0 + $0x18] sm:$0xff]  }
   0x4   :  { %434 = vmatprep.mubr.msk.bf16.mxu0 %vm93_vm2, %v457_v5  ;;  %442 = vmatprep.mubr.msk.bf16.mxu1 %vm93_vm2, %v458_v7  ;;  %v464_v13 = vld [vmem:[%s552_s0 + $0x38] sm:$0xff]   ;;  %v322_v14 = vld [vmem:[%s553_s2] ss:$0 sm:$0xff] }
   0x5   :  { %432 = vmatprep.subr.bf16.mxu0 %v123_v6  ;;  %451 = vmatprep.subr.bf16.mxu1 %v123_v6 }
   0x7   :  { %433 = vmatpush3.bf16.msra.mxu0 %v123_v6  ;;  %453 = vmatpush3.bf16.msra.mxu1 %v123_v6 }
   0xa   :  { %435 = vmatmul.mubr.msk.bf16.vlgmr.msra.gmra.mrb[0].mxu0 %vm93_vm2, %v459_v8  ;;  %443 = vmatmul.mubr.msk.bf16.vlgmr.msra.gmra.mrb[0].mxu1 %vm93_vm2, %v460_v9 }
   0xb   :  { %438 = vmatprep.mubr.msk.bf16.mxu0 %vm93_vm2, %v461_v10  ;;  %446 = vmatprep.mubr.msk.bf16.mxu1 %vm93_vm2, %v462_v11 }
  0x12   :  { %439 = vmatmul.mubr.msk.bf16.gmra.mrb[4].mxu0 %vm93_vm2, %v463_v12  ;;  %447 = vmatmul.mubr.msk.bf16.gmra.mrb[4].mxu1 %vm93_vm2, %v464_v13 }
  0xdd   :  { %v436_v15 = vpop.f32.mrb[0].mxu0  ;;  %v444_v16 = vpop.f32.mrb[0].mxu1 }
  0xde   :  { %v168_v17 = vadd.f32 %v436_v15, %v322_v14  ;;  %v200_v18 = vadd.f32 %v444_v16, %v322_v14  ;;  %v159_v19 = vpop.f32.mrb[1].mxu0  ;;  %v191_v20 = vpop.f32.mrb[1].mxu1 }
  0xdf   :  { %v160_v21 = vadd.f32 %v322_v14, %v159_v19  ;;  %v192_v22 = vadd.f32 %v322_v14, %v191_v20  ;;  %v437_v23 = vpop.f32.mrb[2].mxu0  ;;  %v445_v24 = vpop.f32.mrb[2].mxu1 }
  0xe0   :  { %v171_v25 = vadd.f32 %v437_v23, %v322_v14  ;;  %v203_v26 = vadd.f32 %v445_v24, %v322_v14  ;;  %v162_v27 = vpop.f32.mrb[3].mxu0  ;;  %v194_v28 = vpop.f32.mrb[3].mxu1  ;;  %v224_v31 = vmax.f32 %v168_v17, 0.0  ;;  %v232_v32 = vmax.f32 %v200_v18, 0.0 }
  0xe1   :  { %v163_v29 = vadd.f32 %v322_v14, %v162_v27  ;;  %v195_v30 = vadd.f32 %v322_v14, %v194_v28  ;;  %v222_v35 = vmax.f32 %v160_v21, 0.0  ;;  %v230_v36 = vmax.f32 %v192_v22, 0.0 }
  0xe2   :  { %v225_v33 = vmax.f32 %v171_v25, 0.0  ;;  %v233_v34 = vmax.f32 %v203_v26, 0.0 }
  0xe3   :  { %v223_v37 = vmax.f32 %v163_v29, 0.0  ;;  %v231_v38 = vmax.f32 %v195_v30, 0.0 }
  0xe4   :  { %v381_v39 = vpack.c.bf16 %v225_v33, %v224_v31  ;;  %v401_v40 = vpack.c.bf16 %v233_v34, %v232_v32 }
  0xe5   :  { %v376_v41 = vpack.c.bf16 %v223_v37, %v222_v35  ;;  %v396_v42 = vpack.c.bf16 %v231_v38, %v230_v36  ;;  %v440_v43 = vpop.f32.mrb[4].mxu0  ;;  %v448_v44 = vpop.f32.mrb[4].mxu1 }
  0xe6   :  { %413 = vst [vmem:[%s554_s3 + $0x8] sm:$0xff] %v381_v39   ;;  %417 = vst [vmem:[%s554_s3 + $0x28] sm:$0xff] %v401_v40   ;;  %v184_v45 = vadd.f32 %v440_v43, %v322_v14  ;;  %v216_v46 = vadd.f32 %v448_v44, %v322_v14  ;;  %v175_v47 = vpop.f32.mrb[5].mxu0  ;;  %v207_v48 = vpop.f32.mrb[5].mxu1 }
  0xe7   :  { %377 = vst [vmem:[%s554_s3] sm:$0xff] %v376_v41   ;;  %416 = vst [vmem:[%s554_s3 + $0x20] sm:$0xff] %v396_v42   ;;  %v176_v49 = vadd.f32 %v322_v14, %v175_v47  ;;  %v208_v50 = vadd.f32 %v322_v14, %v207_v48  ;;  %v441_v51 = vpop.f32.mrb[6].mxu0  ;;  %v449_v52 = vpop.f32.mrb[6].mxu1 }
  0xe8   :  { %v187_v53 = vadd.f32 %v441_v51, %v322_v14  ;;  %v219_v54 = vadd.f32 %v449_v52, %v322_v14  ;;  %v178_v55 = vpop.f32.mrb[7].mxu0  ;;  %v210_v56 = vpop.f32.mrb[7].mxu1  ;;  %v228_v59 = vmax.f32 %v184_v45, 0.0  ;;  %v236_v60 = vmax.f32 %v216_v46, 0.0 }
  0xe9   :  { %v179_v57 = vadd.f32 %v322_v14, %v178_v55  ;;  %v211_v58 = vadd.f32 %v322_v14, %v210_v56  ;;  %v226_v63 = vmax.f32 %v176_v49, 0.0  ;;  %v234_v0 = vmax.f32 %v208_v50, 0.0 }
  0xea   :  { %v229_v61 = vmax.f32 %v187_v53, 0.0  ;;  %v237_v62 = vmax.f32 %v219_v54, 0.0 }
  0xeb   :  { %v227_v1 = vmax.f32 %v179_v57, 0.0  ;;  %v235_v2 = vmax.f32 %v211_v58, 0.0 }
  0xec   :  { %v391_v3 = vpack.c.bf16 %v229_v61, %v228_v59  ;;  %v411_v4 = vpack.c.bf16 %v237_v62, %v236_v60 }
  0xed   :  { %v386_v5 = vpack.c.bf16 %v227_v1, %v226_v63  ;;  %v406_v6 = vpack.c.bf16 %v235_v2, %v234_v0 }
  0xee   :  { %415 = vst [vmem:[%s554_s3 + $0x18] sm:$0xff] %v391_v3   ;;  %419 = vst [vmem:[%s554_s3 + $0x38] sm:$0xff] %v411_v4  }
  0xef   :  { %414 = vst [vmem:[%s554_s3 + $0x10] sm:$0xff] %v386_v5   ;;  %418 = vst [vmem:[%s554_s3 + $0x30] sm:$0xff] %v406_v6  }

// kernel: _lambda_.10
= control target key start
LH: loop header
LB: loop body
LE: loop exit
PB: predicated region body
PF: predicated region fallthrough
CT: control target
= control target key end

     0   :  { %v269_v0 = vmov 0   ;;  %vm116_vm0 = vcmask 130048   ;;  %s338_s1 = inlined_call_operand.vmem [shape: bf16[144,128], index: 1, kind: input, shape index: {}]   ;;  %s339_s0 = inlined_call_operand.vmem [shape: bf16[32,144], index: 0, kind: input, shape index: {}]   ;;  %s340_s2 = inlined_call_operand.vmem [shape: f32[1,128], index: 2, kind: input, shape index: {}]   ;;  %s341_s3 = inlined_call_operand.vmem [shape: bf16[32,128], index: 3, kind: output, shape index: {}]  }
   0x1   :  { %123 = vmatprep.subr.bf16.mxu0 %v269_v0  ;;  %235 = vmatprep.subr.bf16.mxu1 %v269_v0  ;;  %v254_v1 = vld [vmem:[%s338_s1] sm:$0xff]   ;;  %v255_v2 = vld [vmem:[%s338_s1 + $0x8] sm:$0xff]   ;;  %v256_v3 = vld [vmem:[%s338_s1 + $0x10] sm:$0xff]  }
   0x2   :  { %124 = vmatpush1.bf16.msra.mxu0 %v254_v1  ;;  %244 = vmatpush1.bf16.msra.mxu1 %v254_v1  ;;  %v257_v4 = vld [vmem:[%s338_s1 + $0x18] sm:$0xff]   ;;  %v265_v5 = vld [vmem:[%s339_s0 + $0x4] ss:$8 sps:$4 sm:$0xff]   ;;  %v260_v9 = vld [vmem:[%s338_s1 + $0x30] sm:$0xff]  }
   0x3   :  { %125 = vmatprep.subr.bf16.mxu0 %v269_v0  ;;  %236 = vmatprep.subr.bf16.mxu1 %v269_v0  ;;  %v268_v6 = vld [vmem:[%s339_s0 + $0x14] ss:$8 sps:$4 sm:$0xff]   ;;  %v258_v7 = vld [vmem:[%s338_s1 + $0x20] sm:$0xff]   ;;  %v259_v8 = vld [vmem:[%s338_s1 + $0x28] sm:$0xff]  }
   0x4   :  { %214 = vmatprep.mubr.msk.bf16.mxu0 %vm116_vm0, %v265_v5  ;;  %215 = vmatprep.mubr.msk.bf16.mxu1 %vm116_vm0, %v268_v6  ;;  %v261_v10 = vld [vmem:[%s338_s1 + $0x38] sm:$0xff]   ;;  %v262_v11 = vld [vmem:[%s338_s1 + $0x40] sm:$0xff]  }
   0x5   :  { %v263_v12 = vld [vmem:[%s339_s0] ss:$8 sps:$4 sm:$0xff]   ;;  %v266_v13 = vld [vmem:[%s339_s0 + $0x10] ss:$8 sps:$4 sm:$0xff]  }
   0x6   :  { %126 = vmatpush1.bf16.msra.mxu0 %v255_v2  ;;  %245 = vmatpush1.bf16.msra.mxu1 %v255_v2  ;;  %v200_v14 = vld [vmem:[%s340_s2] ss:$0 sm:$0xff] }
   0x7   :  { %127 = vmatprep.subr.bf16.mxu0 %v269_v0  ;;  %237 = vmatprep.subr.bf16.mxu1 %v269_v0 }
   0xa   :  { %128 = vmatpush1.bf16.msra.mxu0 %v256_v3  ;;  %246 = vmatpush1.bf16.msra.mxu1 %v256_v3 }
   0xb   :  { %129 = vmatprep.subr.bf16.mxu0 %v269_v0  ;;  %238 = vmatprep.subr.bf16.mxu1 %v269_v0 }
   0xe   :  { %130 = vmatpush1.bf16.msra.mxu0 %v257_v4  ;;  %247 = vmatpush1.bf16.msra.mxu1 %v257_v4 }
   0xf   :  { %131 = vmatprep.subr.bf16.mxu0 %v269_v0  ;;  %239 = vmatprep.subr.bf16.mxu1 %v269_v0 }
  0x12   :  { %132 = vmatpush1.bf16.msra.mxu0 %v258_v7  ;;  %248 = vmatpush1.bf16.msra.mxu1 %v258_v7 }
  0x13   :  { %133 = vmatprep.subr.bf16.mxu0 %v269_v0  ;;  %240 = vmatprep.subr.bf16.mxu1 %v269_v0 }
  0x16   :  { %134 = vmatpush1.bf16.msra.mxu0 %v259_v8  ;;  %249 = vmatpush1.bf16.msra.mxu1 %v259_v8 }
  0x17   :  { %135 = vmatprep.subr.bf16.mxu0 %v269_v0  ;;  %241 = vmatprep.subr.bf16.mxu1 %v269_v0 }
  0x1a   :  { %136 = vmatpush1.bf16.msra.mxu0 %v260_v9  ;;  %250 = vmatpush1.bf16.msra.mxu1 %v260_v9 }
  0x1b   :  { %137 = vmatprep.subr.bf16.mxu0 %v269_v0  ;;  %242 = vmatprep.subr.bf16.mxu1 %v269_v0 }
  0x1e   :  { %138 = vmatpush1.bf16.msra.mxu0 %v261_v10  ;;  %251 = vmatpush1.bf16.msra.mxu1 %v261_v10 }
  0x1f   :  { %139 = vmatprep.subr.bf16.mxu0 %v269_v0  ;;  %243 = vmatprep.subr.bf16.mxu1 %v269_v0 }
  0x22   :  { %140 = vmatpush1.bf16.msra.mxu0 %v262_v11  ;;  %252 = vmatpush1.bf16.msra.mxu1 %v262_v11 }
  0x25   :  { %156 = vmatmul.mubr.bf16.vlgmr.msra.gmra.mrb[0].mxu0 %v263_v12  ;;  %164 = vmatmul.mubr.bf16.vlgmr.msra.gmra.mrb[0].mxu1 %v266_v13 }
  0xf8   :  { %v157_v15 = vpop.f32.mrb[0].mxu0  ;;  %v165_v16 = vpop.f32.mrb[0].mxu1 }
  0xf9   :  { %v158_v17 = vadd.f32 %v200_v14, %v157_v15  ;;  %v166_v18 = vadd.f32 %v200_v14, %v165_v16  ;;  %v159_v19 = vpop.f32.mrb[1].mxu0  ;;  %v167_v20 = vpop.f32.mrb[1].mxu1 }
  0xfa   :  { %v160_v21 = vpop.f32.mrb[2].mxu0  ;;  %v168_v22 = vpop.f32.mrb[2].mxu1 }
  0xfb   :  { %v161_v23 = vadd.f32 %v200_v14, %v160_v21  ;;  %v169_v24 = vadd.f32 %v200_v14, %v168_v22  ;;  %v162_v25 = vpop.f32.mrb[3].mxu0  ;;  %v170_v26 = vpop.f32.mrb[3].mxu1  ;;  %v172_v27 = vmax.f32 %v158_v17, 0.0  ;;  %v174_v28 = vmax.f32 %v166_v18, 0.0 }
  0xfd   :  { %v173_v29 = vmax.f32 %v161_v23, 0.0  ;;  %v175_v30 = vmax.f32 %v169_v24, 0.0 }
  0xff   :  { %v227_v31 = vpack.c.bf16 %v173_v29, %v172_v27  ;;  %v232_v32 = vpack.c.bf16 %v175_v30, %v174_v28 }
 0x101   :  { %228 = vst [vmem:[%s341_s3] sm:$0xff] %v227_v31   ;;  %234 = vst [vmem:[%s341_s3 + $0x8] sm:$0xff] %v232_v32  }

// kernel: _lambda_.11
= control target key start
LH: loop header
LB: loop body
LE: loop exit
PB: predicated region body
PF: predicated region fallthrough
CT: control target
= control target key end

     0   :  { %vm204_vm0 = vcmask 261120   ;;  %s550_s1 = inlined_call_operand.vmem [shape: bf16[288,128], index: 1, kind: input, shape index: {}]   ;;  %s551_s0 = inlined_call_operand.vmem [shape: bf16[32,288], index: 0, kind: input, shape index: {}]   ;;  %s552_s2 = inlined_call_operand.vmem [shape: f32[1,128], index: 2, kind: input, shape index: {}]   ;;  %s553_s3 = inlined_call_operand.vmem [shape: bf16[32,128], index: 3, kind: output, shape index: {}]  }
   0x1   :  { %v423_v0 = vld [vmem:[%s550_s1 + $0x40] sm:$0xff]   ;;  %v425_v2 = vld [vmem:[%s550_s1 + $0x48] sm:$0xff]   ;;  %v427_v4 = vld [vmem:[%s550_s1 + $0x50] sm:$0xff]  }
   0x2   :  { %v424_v1 = vld [vmem:[%s550_s1] sm:$0xff]   ;;  %383 = vmatprep.subr.bf16.mxu0 %v423_v0  ;;  %v426_v3 = vld [vmem:[%s550_s1 + $0x8] sm:$0xff]   ;;  %v428_v5 = vld [vmem:[%s550_s1 + $0x10] sm:$0xff]  }
   0x3   :  { %384 = vmatpush3.bf16.msra.mxu0 %v424_v1  ;;  %v429_v6 = vld [vmem:[%s550_s1 + $0x58] sm:$0xff]   ;;  %v431_v8 = vld [vmem:[%s550_s1 + $0x60] sm:$0xff]   ;;  %v433_v11 = vld [vmem:[%s550_s1 + $0x68] sm:$0xff]  }
   0x4   :  { %385 = vmatprep.subr.bf16.mxu0 %v425_v2  ;;  %v430_v7 = vld [vmem:[%s550_s1 + $0x18] sm:$0xff]   ;;  %v432_v9 = vld [vmem:[%s550_s1 + $0x20] sm:$0xff]   ;;  %v434_v12 = vld [vmem:[%s550_s1 + $0x28] sm:$0xff]  }
   0x5   :  { %v438_v10 = vld [vmem:[%s550_s1 + $0x80] sm:$0xff]   ;;  %v435_v13 = vld [vmem:[%s550_s1 + $0x70] sm:$0xff]   ;;  %v443_v15 = vld [vmem:[%s550_s1 + $0x88] sm:$0xff]  }
   0x6   :  { %415 = vmatprep.subr.bf16.mxu1 %v438_v10  ;;  %v442_v14 = vld [vmem:[%s551_s0 + $0x4] ss:$12 sps:$4 sm:$0xff]   ;;  %v444_v16 = vld [vmem:[%s551_s0 + $0x8] ss:$12 sps:$4 sm:$0xff]   ;;  %v445_v17 = vld [vmem:[%s551_s0 + $0x20] ss:$12 sps:$4 sm:$0xff]  }
   0x7   :  { %386 = vmatpush3.bf16.msra.mxu0 %v426_v3  ;;  %416 = vmatpush3.bf16.msra.mxu1 %v438_v10  ;;  %v436_v18 = vld [vmem:[%s550_s1 + $0x30] sm:$0xff]   ;;  %v437_v19 = vld [vmem:[%s550_s1 + $0x78] sm:$0xff]   ;;  %v440_v21 = vld [vmem:[%s551_s0] ss:$12 sps:$4 sm:$0xff]  }
   0x8   :  { %387 = vmatprep.subr.bf16.mxu0 %v427_v4  ;;  %243 = vmatprep.mubr.bf16.mxu0 %v442_v14  ;;  %v439_v20 = vld [vmem:[%s550_s1 + $0x38] sm:$0xff]   ;;  %v337_v30 = vld [vmem:[%s552_s2] ss:$0 sm:$0xff] }
   0x9   :  { %417 = vmatprep.subr.bf16.mxu1 %v443_v15  ;;  %419 = vmatprep.mubr.msk.bf16.mxu1 %vm204_vm0, %v444_v16  ;;  %v446_v22 = vld [vmem:[%s551_s0 + $0x1c] ss:$12 sps:$4 sm:$0xff]   ;;  %v448_v23 = vld [vmem:[%s551_s0 + $0x18] ss:$12 sps:$4 sm:$0xff]  }
   0xb   :  { %388 = vmatpush3.bf16.msra.mxu0 %v428_v5  ;;  %418 = vmatpush3.bf16.msra.mxu1 %v443_v15 }
   0xc   :  { %389 = vmatprep.subr.bf16.mxu0 %v429_v6 }
   0xe   :  { %420 = vmatmul.mubr.msk.bf16.vlgmr.msra.gmra.mrb[0].mxu1 %vm204_vm0, %v445_v17 }
   0xf   :  { %390 = vmatpush3.bf16.msra.mxu0 %v430_v7 }
  0x10   :  { %391 = vmatprep.subr.bf16.mxu0 %v431_v8 }
  0x13   :  { %392 = vmatpush3.bf16.msra.mxu0 %v432_v9 }
  0x14   :  { %393 = vmatprep.subr.bf16.mxu0 %v433_v11 }
  0x17   :  { %394 = vmatpush3.bf16.msra.mxu0 %v434_v12 }
  0x18   :  { %395 = vmatprep.subr.bf16.mxu0 %v435_v13 }
  0x1b   :  { %396 = vmatpush3.bf16.msra.mxu0 %v436_v18 }
  0x1c   :  { %397 = vmatprep.subr.bf16.mxu0 %v437_v19 }
  0x1f   :  { %398 = vmatpush3.bf16.msra.mxu0 %v439_v20 }
  0x22   :  { %244 = vmatmul.mubr.bf16.vlgmr.msra.gmra.mrb[0].mxu0 %v440_v21 }
  0x23   :  { %251 = vmatprep.mubr.bf16.mxu0 %v446_v22 }
  0x2a   :  { %252 = vmatmul.mubr.bf16.gmra.mrb[4].mxu0 %v448_v23 }
  0xe1   :  { %v421_v24 = vpop.f32.mrb[0].mxu1 }
  0xe2   :  { %v294_v25 = vpop.f32.mrb[1].mxu1 }
  0xe3   :  { %v422_v26 = vpop.f32.mrb[2].mxu1 }
  0xe4   :  { %v297_v27 = vpop.f32.mrb[3].mxu1 }
  0xf5   :  { %v399_v28 = vpop.f32.mrb[0].mxu0 }
  0xf6   :  { %v400_v29 = vpop.f32.mrb[1].mxu0 }
  0xf7   :  { %v401_v31 = vadd.f32 %v400_v29, %v399_v28  ;;  %v402_v32 = vpop.f32.mrb[2].mxu0 }
  0xf8   :  { %v403_v33 = vpop.f32.mrb[3].mxu0 }
  0xf9   :  { %v404_v34 = vadd.f32 %v403_v33, %v402_v32  ;;  %v246_v35 = vadd.f32 %v401_v31, %v337_v30 }
  0xfb   :  { %v295_v36 = vadd.f32 %v294_v25, %v246_v35  ;;  %v249_v37 = vadd.f32 %v404_v34, %v337_v30 }
  0xfd   :  { %v298_v38 = vadd.f32 %v297_v27, %v249_v37  ;;  %v405_v39 = vpop.f32.mrb[4].mxu0  ;;  %v309_v41 = vmax.f32 %v295_v36, 0.0 }
  0xfe   :  { %v406_v40 = vpop.f32.mrb[5].mxu0 }
  0xff   :  { %v310_v42 = vmax.f32 %v298_v38, 0.0  ;;  %v407_v43 = vadd.f32 %v406_v40, %v405_v39  ;;  %v408_v44 = vpop.f32.mrb[6].mxu0 }
 0x100   :  { %v409_v45 = vpop.f32.mrb[7].mxu0 }
 0x101   :  { %v375_v46 = vpack.c.bf16 %v310_v42, %v309_v41  ;;  %v254_v47 = vadd.f32 %v407_v43, %v337_v30  ;;  %v410_v48 = vadd.f32 %v409_v45, %v408_v44 }
 0x103   :  { %376 = vst [vmem:[%s553_s3] sm:$0xff] %v375_v46   ;;  %v303_v49 = vadd.f32 %v421_v24, %v254_v47  ;;  %v257_v50 = vadd.f32 %v410_v48, %v337_v30 }
 0x105   :  { %v306_v51 = vadd.f32 %v422_v26, %v257_v50  ;;  %v311_v52 = vmax.f32 %v303_v49, 0.0 }
 0x107   :  { %v312_v53 = vmax.f32 %v306_v51, 0.0 }
 0x109   :  { %v380_v54 = vpack.c.bf16 %v312_v53, %v311_v52 }
 0x10b   :  { %382 = vst [vmem:[%s553_s3 + $0x8] sm:$0xff] %v380_v54  }

// kernel: _lambda_.13
= control target key start
LH: loop header
LB: loop body
LE: loop exit
PB: predicated region body
PF: predicated region fallthrough
CT: control target
= control target key end

     0   :  { %vm27_vm0 = vcmask 130048   ;;  %s213_s1 = inlined_call_operand.vmem [shape: f32[16,128], index: 1, kind: input, shape index: {}]   ;;  %s214_s0 = inlined_call_operand.vmem [shape: f32[32,16], index: 0, kind: input, shape index: {}]   ;;  %s215_s2 = inlined_call_operand.vmem [shape: f32[1,128], index: 2, kind: input, shape index: {}]   ;;  %s216_s3 = inlined_call_operand.vmem [shape: f32[32,128], index: 3, kind: output, shape index: {}]  }
   0x1   :  { %v18_v0 = vld [vmem:[%s213_s1] sm:$0xff]  ;;  %v19_v1 = vld [vmem:[%s213_s1 + $0x8] sm:$0xff]  ;;  %v16_v4 = vld [vmem:[%s214_s0 + $0x10] sm:$0xff] }
   0x2   :  { %v14_v2 = vld [vmem:[%s214_s0] sm:$0xff]  ;;  %v154_v3 = vpack.c.bf16 %v19_v1, %v18_v0  ;;  %151 = vmatprep.mubr.msk.f32.mxu1 %vm27_vm0, %v16_v4  ;;  %v15_v5 = vld [vmem:[%s214_s0 + $0x8] sm:$0xff]  ;;  %v17_v6 = vld [vmem:[%s214_s0 + $0x18] sm:$0xff] }
   0x3   :  { %148 = vmatprep.mubr.msk.f32.mxu0 %vm27_vm0, %v14_v2  ;;  %v133_v7 = vld [vmem:[%s215_s2] ss:$0 sm:$0xff] }
   0x4   :  { %155 = vmatprep.subr.bf16.mxu0 %v154_v3  ;;  %158 = vmatprep.subr.bf16.mxu1 %v154_v3 }
   0x5   :  { %157 = vmatpush3.bf16.msra.mxu0 %v154_v3  ;;  %159 = vmatpush3.bf16.msra.mxu1 %v154_v3 }
   0x8   :  { %149 = vmatmul.mubr.msk.f32.vlgmr.msra.gmra.mrb[0].mxu0 %vm27_vm0, %v15_v5  ;;  %152 = vmatmul.mubr.msk.f32.vlgmr.msra.gmra.mrb[0].mxu1 %vm27_vm0, %v17_v6 }
  0xdb   :  { %v150_v8 = vpop.f32.mrb[0].mxu0  ;;  %v153_v9 = vpop.f32.mrb[0].mxu1 }
  0xdc   :  { %v112_v10 = vadd.f32 %v150_v8, %v133_v7  ;;  %v122_v11 = vadd.f32 %v153_v9, %v133_v7  ;;  %v106_v12 = vpop.f32.mrb[1].mxu0  ;;  %v116_v13 = vpop.f32.mrb[1].mxu1 }
  0xdd   :  { %v107_v14 = vadd.f32 %v133_v7, %v106_v12  ;;  %v117_v15 = vadd.f32 %v133_v7, %v116_v13 }
  0xde   :  { %126 = vst [vmem:[%s216_s3 + $0x8] sm:$0xff] %v112_v10  ;;  %128 = vst [vmem:[%s216_s3 + $0x18] sm:$0xff] %v122_v11 }
  0xdf   :  { %125 = vst [vmem:[%s216_s3] sm:$0xff] %v107_v14  ;;  %127 = vst [vmem:[%s216_s3 + $0x10] sm:$0xff] %v117_v15 }

// kernel: _lambda_.16
= control target key start
LH: loop header
LB: loop body
LE: loop exit
PB: predicated region body
PF: predicated region fallthrough
CT: control target
= control target key end

     0   :  { %vm31_vm0 = vcmask 1043456   ;;  %vm24_vm1 = vcmask 31744   ;;  %s166_s1 = inlined_call_operand.vmem [shape: f32[4,128], index: 1, kind: input, shape index: {}]   ;;  %s167_s0 = inlined_call_operand.vmem [shape: f32[16,4], index: 0, kind: input, shape index: {}]   ;;  %s168_s2 = inlined_call_operand.vmem [shape: f32[1,128], index: 2, kind: input, shape index: {}]   ;;  %s169_s3 = inlined_call_operand.vmem [shape: f32[16,128], index: 3, kind: output, shape index: {}]  }
   0x1   :  { %v16_v0 = vld [vmem:[%s166_s1] sm:$0xf]  ;;  %v15_v2 = vld [vmem:[%s167_s0 + $0x8] sm:$0xff] }
   0x2   :  { %v14_v1 = vld [vmem:[%s167_s0] sm:$0xff]  ;;  %123 = vmatprep.subr.msk.mxu0 %vm31_vm0, %v16_v0 }
   0x3   :  { %125 = vmatprep.mubr.msk.f32.mxu0 %vm24_vm1, %v14_v1  ;;  %124 = vmatpush3.msk.msra.mxu0 %vm31_vm0, %v16_v0  ;;  %v116_v3 = vld [vmem:[%s168_s2] ss:$0 sm:$0xff] }
   0x4   :  { %126 = vmatmul.mubr.msk.f32.vlgmr.msra.gmra.mrb[0].mxu0 %vm24_vm1, %v15_v2 }
  0xd7   :  { %v127_v4 = vpop.f32.mrb[0].mxu0 }
  0xd8   :  { %v107_v5 = vadd.f32 %v127_v4, %v116_v3  ;;  %v101_v6 = vpop.f32.mrb[1].mxu0 }
  0xd9   :  { %v102_v7 = vadd.f32 %v116_v3, %v101_v6 }
  0xda   :  { %111 = vst [vmem:[%s169_s3 + $0x8] sm:$0xff] %v107_v5 }
  0xdb   :  { %110 = vst [vmem:[%s169_s3] sm:$0xff] %v102_v7 }

// kernel: _lambda_.17
= control target key start
LH: loop header
LB: loop body
LE: loop exit
PB: predicated region body
PF: predicated region fallthrough
CT: control target
= control target key end

     0   :  { %s581_s12 = smov 0   ;;  %s583_s13 = smov 0   ;;  %s659_s0 = inlined_call_operand.vmem [shape: f32[16,4], index: 0, kind: input, shape index: {}]   ;;  %s660_s1 = inlined_call_operand.vmem [shape: f32[4,512], index: 1, kind: input, shape index: {}]   ;;  %s661_s2 = inlined_call_operand.vmem [shape: f32[1,512], index: 2, kind: input, shape index: {}]   ;;  %s662_s3 = inlined_call_operand.vmem [shape: f32[16,512], index: 3, kind: output, shape index: {}]  }
   0x1   :  { %s585_s14 = smov 0   ;;  %s587_s15 = smov 0  }
   0x2   :  { %s589_s16 = smov 0  }
   0x3 LB: > { %s456_s17 = sadd.s32 4294967295, %s558_s16   ;;  %s22_s18 = sadd.s32 1, %s554_s15  ;;  %s558_s16 = sphi %s589_s16, %s13_s16   ;;  %s554_s15 = sphi %s587_s15, %s667_s15   ;;  %s550_s14 = sphi %s585_s14, %s666_s14   ;;  %s546_s13 = sphi %s583_s13, %s665_s13   ;;  %s542_s12 = sphi %s581_s12, %s664_s12  }
   0x4   : > { %p23_p0 = scmp.ge.s32.totalorder %s22_s18, 2  ;;  %s112_s19 = sadd.s32 1, %s546_s13 }
   0x5   : > { %p122_p1 = scmp.ne.s32.totalorder %s546_s13, %s542_s12  ;;  %p123_p2 = scmp.eq.s32.totalorder %s456_s17, 1 }
   0x6   : > { %s669_s18 = smov (%p23_p0, %s22_s18), 0  ;;  %p461_p4 = scmp.ge.s32.totalorder %s558_s16, 1 }
   0x7   : > { %p613_p3 = por %p123_p2, %p122_p1  ;;  %s108_s21 = ssub.s32 %s554_s15, %s669_s18 }
   0x8   : > { %p173_p5 = scmp.lt.s32.totalorder %s558_s16, 3  ;;  %p110_p6 = scmp.eq.s32.totalorder %s108_s21, 0 }
   0xa   : > { %p174_p7 = pnand %p461_p4, %p173_p5 }
   0xb   : > { %s622_s22 = scalar_select %p110_p6, %s546_s13, %s112_s19  }
   0xc   : > { %177 = sbr.rel (%p174_p7) target bundleno = 251 (0xfb), region = 32  ;;  %s463_s23 = sshll.u32 (!%p174_p7), %s550_s14, 1  ;;  %v560_v0 = vmov (!%p174_p7), 0.0   ;;  %vm248_vm0 = vcmask (!%p174_p7), 1043456   ;;  %v224_v3 = vld [vmem:[%s659_s0] sm:$0xff] (!%p174_p7)  ;;  %vm241_vm1 = vcmask (!%p174_p7), 31744   ;;  %v229_v5 = vlaneseq (!%p174_p7) }
   0xd   : > { %p212_p8 = scmp.lt.s32.totalorder (!%p174_p7), %s463_s23, 3  ;;  %317 = vmatprep.mubr.f32.mxu0 (!%p174_p7), %v560_v0  ;;  %323 = vmatprep.mubr.f32.mxu1 (!%p174_p7), %v560_v0  ;;  %v225_v4 = vld [vmem:[%s659_s0 + $0x8] sm:$0xff] (!%p174_p7)  ;;  %s202_s8 = sand.u32 (!%p174_p7), 1, %s542_s12  }
   0xe   : > { %v230_v6 = vshrl.u32 (!%p174_p7), %v229_v5, 7  ;;  %s462_s9 = sshll.u32 (!%p174_p7), %s202_s8, 5 }
   0xf   : > { %s204_s10 = scalar_lea.vmem (!%p174_p7), [#allocation2], %s462_s9 }
  0x10   : > { %v231_v7 = vsub.s32 (!%p174_p7), 0, %v230_v6  ;;  %v235_v9 = vsub.s32 (!%p174_p7), 1, %v230_v6 }
  0x13   : > { %s671_s23 = smov (!%p212_p8, %s463_s23), 3  ;;  %s475_s11 = sshll.u32 (%p613_p3), %s550_s14, 4 }
  0x14   : > { %s464_s24 = sshll.u32 %s671_s23, 2  ;;  %s220_s7 = scalar_lea.vmem %s661_s2, %s671_s23 }
  0x15   : > { %s215_s27 = scalar_lea.vmem %s660_s1, %s464_s24  ;;  %v227_v8 = vld [vmem:[%s220_s7] sm:$0x3]  ;;  %s346_s19 = scalar_lea.vmem (%p613_p3), %s662_s3, %s475_s11 }
  0x16   : > { %v226_v1 = vld [vmem:[%s215_s27] sm:$0xff]  ;;  %v232_v10 = vrot.slane %v227_v8, %v231_v7  ;;  %v236_v11 = vrot.slane %v227_v8, %v235_v9 }
  0x17   : > { %v240_v2 = vcombine.high %v226_v1, %v226_v1 }
  0x19   : > { %466 = vmatprep.subr.msk.mxu0 %vm248_vm0, %v240_v2  ;;  %476 = vmatprep.subr.msk.mxu1 %vm248_vm0, %v240_v2 }
  0x1a   : > { %467 = vmatpush1.msk.msra.mxu0 %vm248_vm0, %v226_v1  ;;  %477 = vmatpush1.msk.msra.mxu1 %vm248_vm0, %v226_v1 }
  0x1b   : > { %468 = vmatmul.mubr.msk.f32.vlgmr.msra.gmra.mrb[0].mxu0 %vm241_vm1, %v224_v3  ;;  %469 = vmatmul.mubr.msk.f32.vlgmr.msra.gmra.mrb[0].mxu1 %vm241_vm1, %v225_v4 }
  0xec   : > { %340 = sbr.rel (!%p613_p3) target bundleno = 251 (0xfb), region = 36 }
  0xee   : > { %v319_v12 = vpop.f32.mrb[0].mxu0  ;;  %v325_v13 = vpop.f32.mrb[0].mxu1 }
  0xef   : > { %v320_v14 = vadd.f32 %v319_v12, %v232_v10  ;;  %v326_v15 = vadd.f32 %v325_v13, %v232_v10  ;;  %v321_v16 = vpop.f32.mrb[1].mxu0  ;;  %v327_v17 = vpop.f32.mrb[1].mxu1 }
  0xf0   : > { %v322_v18 = vadd.f32 %v321_v16, %v236_v11  ;;  %v328_v19 = vadd.f32 %v327_v17, %v236_v11 }
  0xf1   : > { %330 = vst [vmem:[%s204_s10] sm:$0xff] %v320_v14  ;;  %332 = vst [vmem:[%s204_s10 + $0x10] sm:$0xff] %v326_v15 }
  0xf2   : > { %331 = vst [vmem:[%s204_s10 + $0x8] sm:$0xff] %v322_v18  ;;  %333 = vst [vmem:[%s204_s10 + $0x18] sm:$0xff] %v328_v19 }
  0xf8   : > { %v359_v20 = vld [vmem:[%s204_s10] sm:$0xff]  ;;  %v363_v22 = vld [vmem:[%s204_s10 + $0x10] sm:$0xff] }
  0xf9   : > { %v361_v21 = vld [vmem:[%s204_s10 + $0x8] sm:$0xff]  ;;  %v365_v23 = vld [vmem:[%s204_s10 + $0x18] sm:$0xff]  ;;  %360 = vst [vmem:[%s346_s19] sm:$0xff] %v359_v20  ;;  %364 = vst [vmem:[%s346_s19 + $0x20] sm:$0xff] %v363_v22 }
  0xfa   : > { %362 = vst [vmem:[%s346_s19 + $0x8] sm:$0xff] %v361_v21  ;;  %366 = vst [vmem:[%s346_s19 + $0x28] sm:$0xff] %v365_v23 }
  0xfb PF: > { %s13_s16 = sadd.s32 1, %s558_s16   ;;  %s664_s12 = smov %s546_s13 }
  0xfc   : > { %p10_p9 = scmp.ge.s32.totalorder %s13_s16, 4   ;;  %s665_s13 = smov %s622_s22 }
  0xfd   : > { %s666_s14 = smov %s554_s15  ;;  %s667_s15 = smov %s669_s18 }
  0xfe   :  { %12 = sbr.rel (!%p10_p9) target bundleno = 3 (0x3), region = 91 }

</bundles_post_ra>
